<compile_context>
chip_gen: v7x
topology: tpu7x:2x2x1
jax: 0.10.0
libtpu: 0.0.40
codegen_flags: <defaults>
</compile_context>

<pallas_src>
import jax
import jax.numpy as jnp
from jax.experimental import pallas as pl
from jax.experimental.pallas import tpu as pltpu

HIDDEN = 128


def _round_up(x, m):
    return ((x + m - 1) // m) * m


def _num_tensorcores():
    # Megacore (v7x-style) detection; falls back to 1 TC (v5e/v6e) if unknown.
    try:
        return max(1, int(getattr(jax.devices()[0], "num_cores", 1)))
    except Exception:
        return 1


def dqn_kernel(x_ref, w1_ref, b1_ref, w2_ref, b2_ref, w3_ref, b3_ref, o_ref):
    # Layer 1: Linear + ReLU. x tile is cast in-kernel (VPU cast hides under
    # MXU/DMA slack; avoids a wrapper-side HBM pass over x on the bf16 path).
    x = x_ref[...].astype(w1_ref.dtype)
    h1 = jnp.dot(x, w1_ref[...], preferred_element_type=jnp.float32)
    h1 = jnp.maximum(h1 + b1_ref[...], 0.0)
    # Layer 2: Linear + ReLU (f32 accumulate, f32 bias/ReLU epilogue)
    h2 = jnp.dot(h1.astype(w2_ref.dtype), w2_ref[...],
                 preferred_element_type=jnp.float32)
    h2 = jnp.maximum(h2 + b2_ref[...], 0.0)
    # Layer 3: Linear (Q-values, no activation)
    q = jnp.dot(h2.astype(w3_ref.dtype), w3_ref[...],
                preferred_element_type=jnp.float32)
    o_ref[...] = (q + b3_ref[...]).astype(o_ref.dtype)


def _default_tile_b(B, *, sublane, num_tc):
    # HBM-stream-bound kernel: biggest tile that is still a small fraction of
    # VMEM (weights + x/out buffers at tile_b=2048 are well under 8 MiB).
    cap = 2048
    tile = min(max(B, sublane), cap)
    if num_tc > 1 and B >= num_tc * sublane:
        # Megacore: each TC should get ~3 pipelined steps so input/output DMA
        # on the dominant streams still overlaps compute.
        target_steps = 3 * num_tc
        tile = min(tile, max(sublane, _round_up(pl.cdiv(B, target_steps), sublane)))
    return _round_up(tile, sublane)


def prepare_params(params, compute_dtype=jnp.float32):
    """One-time parameter prep: cast matmul operands; biases stay f32.

    compute_dtype=jnp.bfloat16 halves weight/activation MXU+DMA bytes and is
    valid on v5e/v6e/v7x (accumulation and the bias/ReLU epilogue stay f32).
    """
    return dict(
        w1=params["w1"].astype(compute_dtype),
        b1=params["b1"].astype(jnp.float32),
        w2=params["w2"].astype(compute_dtype),
        b2=params["b2"].astype(jnp.float32),
        w3=params["w3"].astype(compute_dtype),
        b3=params["b3"].astype(jnp.float32),
    )


def dqn_forward(x, prepared, *, tile_b=None):
    """Fused 3-layer MLP forward pass on TPU via Pallas.

    x: (B, obs_dim) float32
    prepared: output of prepare_params() — w1 (obs,128), b1 (1,128),
              w2 (128,128), b2 (1,128), w3 (128,act), b3 (1,act)
    """
    w1, b1, w2, b2, w3, b3 = (prepared[k] for k in ("w1", "b1", "w2", "b2", "w3", "b3"))
    B, obs_dim = x.shape
    act_dim = w3.shape[1]
    compute_dtype = w1.dtype
    sublane = 16 if compute_dtype == jnp.bfloat16 else 8

    if tile_b is None:
        tile_b = _default_tile_b(B, sublane=sublane, num_tc=_num_tensorcores())
    assert tile_b % sublane == 0, "tile_b must be sublane-aligned"

    # Pad only the batch dim (and only if needed) to a whole number of tiles.
    Bp = _round_up(max(B, tile_b), tile_b)
    xp = x if Bp == B else jnp.pad(x, ((0, Bp - B), (0, 0)))

    grid = (Bp // tile_b,)
    op_bytes = jnp.dtype(compute_dtype).itemsize
    flops = 2 * Bp * (obs_dim * HIDDEN + HIDDEN * HIDDEN + HIDDEN * act_dim)
    bytes_accessed = (
        x.dtype.itemsize * Bp * obs_dim                                   # x (unpadded lanes)
        + op_bytes * (obs_dim * HIDDEN + HIDDEN * HIDDEN + HIDDEN * act_dim)  # weights
        + 4 * (HIDDEN + HIDDEN + act_dim)                                 # biases (f32)
        + 4 * Bp * act_dim                                                # output (f32)
    )

    out = pl.pallas_call(
        dqn_kernel,
        out_shape=jax.ShapeDtypeStruct((Bp, act_dim), jnp.float32),
        grid_spec=pltpu.PrefetchScalarGridSpec(
            num_scalar_prefetch=0,
            grid=grid,
            in_specs=[
                # x tile: full-extent last dim (no lane padding needed).
                pl.BlockSpec((tile_b, obs_dim), lambda i: (i, 0)),
                # Weights / biases: constant block index -> fetched once, resident.
                pl.BlockSpec((obs_dim, HIDDEN), lambda i: (0, 0)),   # w1
                pl.BlockSpec((1, HIDDEN), lambda i: (0, 0)),         # b1
                pl.BlockSpec((HIDDEN, HIDDEN), lambda i: (0, 0)),    # w2
                pl.BlockSpec((1, HIDDEN), lambda i: (0, 0)),         # b2
                pl.BlockSpec((HIDDEN, act_dim), lambda i: (0, 0)),   # w3
                pl.BlockSpec((1, act_dim), lambda i: (0, 0)),        # b3
            ],
            out_specs=pl.BlockSpec((tile_b, act_dim), lambda i: (i, 0)),
        ),
        compiler_params=pltpu.CompilerParams(
            dimension_semantics=("parallel",),                       # megacore-shardable
        ),
        cost_estimate=pl.CostEstimate(
            flops=flops, transcendentals=0, bytes_accessed=bytes_accessed),
    )(xp, w1, b1, w2, b2, w3, b3)

    return out if Bp == B else out[:B]


def init_params(key, obs_dim, act_dim, dtype=jnp.float32):
    """Deterministic synthetic parameter init (PyTorch-Linear-style uniform)."""
    ks = jax.random.split(key, 6)

    def lin(kw, kb, fan_in, fan_out):
        bound = 1.0 / jnp.sqrt(fan_in)
        w = jax.random.uniform(kw, (fan_in, fan_out), dtype, -bound, bound)
        b = jax.random.uniform(kb, (1, fan_out), dtype, -bound, bound)
        return w, b

    w1, b1 = lin(ks[0], ks[1], obs_dim, HIDDEN)
    w2, b2 = lin(ks[2], ks[3], HIDDEN, HIDDEN)
    w3, b3 = lin(ks[4], ks[5], HIDDEN, act_dim)
    return dict(w1=w1, b1=b1, w2=w2, b2=b2, w3=w3, b3=b3)


def dqn_reference(x, p):
    h1 = jnp.maximum(x @ p["w1"] + p["b1"], 0.0)
    h2 = jnp.maximum(h1 @ p["w2"] + p["b2"], 0.0)
    return h2 @ p["w3"] + p["b3"]


if __name__ == "__main__":
    key = jax.random.PRNGKey(0)
    k_param, k_x = jax.random.split(key)

    batch, obs_dim, act_dim = 8, 32, 8
    params = init_params(k_param, obs_dim, act_dim)
    x = jax.random.normal(k_x, (batch, obs_dim), dtype=jnp.float32)
    ref = dqn_reference(x, params)

    # f32 matmul operands: exact match vs reference.
    prep_f32 = prepare_params(params, jnp.float32)
    out_f32 = jax.block_until_ready(dqn_forward(x, prep_f32))
    assert out_f32.shape == (batch, act_dim)
    assert jnp.allclose(out_f32, ref, atol=1e-5, rtol=1e-5), "f32 mismatch vs reference"

    # bf16 matmul operands (f32 accumulate + epilogue) — valid on v5e/v6e/v7x.
    prep_bf16 = prepare_params(params, jnp.bfloat16)
    out_bf16 = jax.block_until_ready(dqn_forward(x, prep_bf16))
    assert out_bf16.shape == (batch, act_dim)
    assert jnp.allclose(out_bf16, ref, atol=1e-1, rtol=1e-1), "bf16 mismatch vs reference"

    # Exercise the multi-step grid path (grid=3) used for larger batches.
    x_big = jax.random.normal(k_x, (48, obs_dim), dtype=jnp.float32)
    out_big = jax.block_until_ready(dqn_forward(x_big, prep_f32, tile_b=16))
    assert jnp.allclose(out_big, dqn_reference(x_big, params), atol=1e-5, rtol=1e-5)

    print("KERNEL_OK")
</pallas_src>

<mosaic_0001>
module attributes {stable_mosaic.version = 11 : i64} {
  func.func @dqn_kernel(%arg0: i32, %arg1: memref<8x32xf32, #tpu.memory_space<vmem>>, %arg2: memref<32x128xf32, #tpu.memory_space<vmem>>, %arg3: memref<1x128xf32, #tpu.memory_space<vmem>>, %arg4: memref<128x128xf32, #tpu.memory_space<vmem>>, %arg5: memref<1x128xf32, #tpu.memory_space<vmem>>, %arg6: memref<128x8xf32, #tpu.memory_space<vmem>>, %arg7: memref<1x8xf32, #tpu.memory_space<vmem>>, %arg8: memref<8x8xf32, #tpu.memory_space<vmem>>) attributes {dimension_semantics = [#tpu.dimension_semantics<parallel>], iteration_bounds = array<i64: 1>, scalar_prefetch = 0 : i64, scratch_operands = 0 : i64, tpu.core_type = #tpu.core_type<tc>, window_params = [{transform_indices = @transform_0, window_bounds = array<i64: 8, 32>}, {pipeline_mode = #tpu.pipeline_mode<synchronous>, transform_indices = @transform_1, window_bounds = array<i64: 32, 128>}, {pipeline_mode = #tpu.pipeline_mode<synchronous>, transform_indices = @transform_2, window_bounds = array<i64: 1, 128>}, {pipeline_mode = #tpu.pipeline_mode<synchronous>, transform_indices = @transform_3, window_bounds = array<i64: 128, 128>}, {pipeline_mode = #tpu.pipeline_mode<synchronous>, transform_indices = @transform_4, window_bounds = array<i64: 1, 128>}, {pipeline_mode = #tpu.pipeline_mode<synchronous>, transform_indices = @transform_5, window_bounds = array<i64: 128, 8>}, {pipeline_mode = #tpu.pipeline_mode<synchronous>, transform_indices = @transform_6, window_bounds = array<i64: 1, 8>}, {transform_indices = @transform_7, window_bounds = array<i64: 8, 8>}]} {
    %c0 = arith.constant 0 : index
    %c0_0 = arith.constant 0 : index
    %0 = vector.load %arg1[%c0, %c0_0] : memref<8x32xf32, #tpu.memory_space<vmem>>, vector<8x32xf32>
    %c0_1 = arith.constant 0 : index
    %c0_2 = arith.constant 0 : index
    %1 = vector.load %arg2[%c0_1, %c0_2] : memref<32x128xf32, #tpu.memory_space<vmem>>, vector<32x128xf32>
    %cst = arith.constant dense<0.000000e+00> : vector<8x128xf32>
    %2 = tpu.matmul %0, %1, %cst {dimension_numbers = #tpu.dot_dimension_numbers<[1], [0], [0], [1], [0, 0, 1, 1], [], []>} : vector<8x32xf32>, vector<32x128xf32>, vector<8x128xf32> -> vector<8x128xf32>
    %c0_3 = arith.constant 0 : index
    %c0_4 = arith.constant 0 : index
    %3 = vector.load %arg3[%c0_3, %c0_4] : memref<1x128xf32, #tpu.memory_space<vmem>>, vector<1x128xf32>
    %4 = vector.broadcast %3 : vector<1x128xf32> to vector<8x128xf32>
    %5 = arith.addf %2, %4 : vector<8x128xf32>
    %cst_5 = arith.constant 0.000000e+00 : f32
    %6 = vector.broadcast %cst_5 : f32 to vector<8x128xf32>
    %7 = arith.maximumf %5, %6 : vector<8x128xf32>
    %c0_6 = arith.constant 0 : index
    %c0_7 = arith.constant 0 : index
    %8 = vector.load %arg4[%c0_6, %c0_7] : memref<128x128xf32, #tpu.memory_space<vmem>>, vector<128x128xf32>
    %cst_8 = arith.constant dense<0.000000e+00> : vector<8x128xf32>
    %9 = tpu.matmul %7, %8, %cst_8 {dimension_numbers = #tpu.dot_dimension_numbers<[1], [0], [0], [1], [0, 0, 1, 1], [], []>} : vector<8x128xf32>, vector<128x128xf32>, vector<8x128xf32> -> vector<8x128xf32>
    %c0_9 = arith.constant 0 : index
    %c0_10 = arith.constant 0 : index
    %10 = vector.load %arg5[%c0_9, %c0_10] : memref<1x128xf32, #tpu.memory_space<vmem>>, vector<1x128xf32>
    %11 = vector.broadcast %10 : vector<1x128xf32> to vector<8x128xf32>
    %12 = arith.addf %9, %11 : vector<8x128xf32>
    %cst_11 = arith.constant 0.000000e+00 : f32
    %13 = vector.broadcast %cst_11 : f32 to vector<8x128xf32>
    %14 = arith.maximumf %12, %13 : vector<8x128xf32>
    %c0_12 = arith.constant 0 : index
    %c0_13 = arith.constant 0 : index
    %15 = vector.load %arg6[%c0_12, %c0_13] : memref<128x8xf32, #tpu.memory_space<vmem>>, vector<128x8xf32>
    %cst_14 = arith.constant dense<0.000000e+00> : vector<8x8xf32>
    %16 = tpu.matmul %14, %15, %cst_14 {dimension_numbers = #tpu.dot_dimension_numbers<[1], [0], [0], [1], [0, 0, 1, 1], [], []>} : vector<8x128xf32>, vector<128x8xf32>, vector<8x8xf32> -> vector<8x8xf32>
    %c0_15 = arith.constant 0 : index
    %c0_16 = arith.constant 0 : index
    %17 = vector.load %arg7[%c0_15, %c0_16] : memref<1x8xf32, #tpu.memory_space<vmem>>, vector<1x8xf32>
    %18 = vector.broadcast %17 : vector<1x8xf32> to vector<8x8xf32>
    %19 = arith.addf %16, %18 : vector<8x8xf32>
    %c0_17 = arith.constant 0 : index
    %c0_18 = arith.constant 0 : index
    %20 = vector.load %arg8[%c0_17, %c0_18] : memref<8x8xf32, #tpu.memory_space<vmem>>, vector<8x8xf32>
    tpu.vector_store %arg8[%c0_17, %c0_18], %19 {strides = array<i32>} : memref<8x8xf32, #tpu.memory_space<vmem>>, vector<8x8xf32>,
    return
  }
  func.func @transform_0(%arg0: i32) -> (i32, i32) {
    %c0_i32 = arith.constant 0 : i32
    %c0_i32_0 = arith.constant 0 : i32
    return %arg0, %c0_i32 : i32, i32
  }
  func.func @transform_1(%arg0: i32) -> (i32, i32) {
    %c0_i32 = arith.constant 0 : i32
    %c0_i32_0 = arith.constant 0 : i32
    %c0_i32_1 = arith.constant 0 : i32
    return %c0_i32, %c0_i32_0 : i32, i32
  }
  func.func @transform_2(%arg0: i32) -> (i32, i32) {
    %c0_i32 = arith.constant 0 : i32
    %c0_i32_0 = arith.constant 0 : i32
    %c0_i32_1 = arith.constant 0 : i32
    return %c0_i32, %c0_i32_0 : i32, i32
  }
  func.func @transform_3(%arg0: i32) -> (i32, i32) {
    %c0_i32 = arith.constant 0 : i32
    %c0_i32_0 = arith.constant 0 : i32
    %c0_i32_1 = arith.constant 0 : i32
    return %c0_i32, %c0_i32_0 : i32, i32
  }
  func.func @transform_4(%arg0: i32) -> (i32, i32) {
    %c0_i32 = arith.constant 0 : i32
    %c0_i32_0 = arith.constant 0 : i32
    %c0_i32_1 = arith.constant 0 : i32
    return %c0_i32, %c0_i32_0 : i32, i32
  }
  func.func @transform_5(%arg0: i32) -> (i32, i32) {
    %c0_i32 = arith.constant 0 : i32
    %c0_i32_0 = arith.constant 0 : i32
    %c0_i32_1 = arith.constant 0 : i32
    return %c0_i32, %c0_i32_0 : i32, i32
  }
  func.func @transform_6(%arg0: i32) -> (i32, i32) {
    %c0_i32 = arith.constant 0 : i32
    %c0_i32_0 = arith.constant 0 : i32
    %c0_i32_1 = arith.constant 0 : i32
    return %c0_i32, %c0_i32_0 : i32, i32
  }
  func.func @transform_7(%arg0: i32) -> (i32, i32) {
    %c0_i32 = arith.constant 0 : i32
    %c0_i32_0 = arith.constant 0 : i32
    return %arg0, %c0_i32 : i32, i32
  }
}

</mosaic_0001>

<bundles_post_ra>
// kernel: tpu_custom_call.1
= control target key start
LH: loop header
LB: loop body
LE: loop exit
PB: predicated region body
PF: predicated region fallthrough
CT: control target
= control target key end

     0   :  { %12 = vsyncpa [#allocation3], 0  ;;  %s765_s0 = inlined_call_operand.vmem [shape: f32[8,32], index: 0, kind: input, shape index: {}]   ;;  %s766_s1 = inlined_call_operand.hbm [shape: f32[32,128], index: 1, kind: input, shape index: {}]   ;;  %s767_s2 = inlined_call_operand.vmem [shape: f32[1,128], index: 2, kind: input, shape index: {}]   ;;  %s768_s3 = inlined_call_operand.vmem [shape: f32[128,128], index: 3, kind: input, shape index: {}]   ;;  %s769_s4 = inlined_call_operand.vmem [shape: f32[1,128], index: 4, kind: input, shape index: {}]   ;;  %s770_s5 = inlined_call_operand.vmem [shape: f32[128,8], index: 5, kind: input, shape index: {}]   ;;  %s771_s6 = inlined_call_operand.vmem [shape: f32[1,8], index: 6, kind: input, shape index: {}]   ;;  %s772_s7 = inlined_call_operand.hbm [shape: f32[8,8], index: 7, kind: output, shape index: {}]  }
   0x1   :  { %13 = vsyncpa [#allocation4], 0  ;;  %s565_s24 = smov [#allocation2]   ;;  %s517_s28 = scalar_lea.hbm %s766_s1, 512 }
   0x2   :  { %s21_s25 = sshll.u32 %s565_s24, 4  ;;  %p518_p0 = scmp.ne.s32.totalorder %s766_s1, %s517_s28  ;;  %s22_s25 = int_to_ptr.vmem [resolvable:$true] %s21_s25 }
   0x3   :  { %p521_p1 = scmp.lt.u32.totalorder %s517_s28, %s766_s1 }
   0x5   :  { %p523_p2 = pnand %p521_p1, %p518_p0 }
   0x7   :  { %526 = shalt.err (!%p523_p2)
}
   0x8   :  { %s527_s10 = scalar_lea.vmem %s22_s25, 512  ;;  %p532_p4 = scmp.lt.s32.totalorder %s22_s25, %s22_s25 }
   0x9   :  { %p528_p3 = scmp.ne.s32.totalorder %s22_s25, %s527_s10  ;;  %p533_p5 = scmp.lt.s32.totalorder %s527_s10, %s527_s10 }
   0xb   :  { %p534_p6 = por %p533_p5, %p532_p4 }
   0xd   :  { %p535_p7 = pnand %p534_p6, %p528_p3 }
   0xf   :  { %538 = shalt.err (!%p535_p7)
}
  0x10   :  { %s566_s11 = smov 128   ;;  %s567_s12 = smov 8  }
  0x11   :  { %27 = dma.hbm_to_vmem [thread:$0]  %s766_s1, 512, %s22_s25, [#allocation3], %s566_s11, %s566_s11, %s567_s12  }
  0x12   :  { %561 = dma.done.wait [#allocation3], 512  }
  0x13   :  { %562 = vsyncadd [#allocation3], 4294966784  ;;  %v568_v0 = vmov 0.0|0.0   ;;  %vm569_vm0 = vmmov 0   ;;  %v570_v1 = vmov 0.0   ;;  %v42_v2 = vld [vmem:[#allocation2] sm:$0xff] }
  0x14   :  { %456 = vmatprep.subr.bf16.mxu0 %v568_v0  ;;  %383 = vmatprep.mubr.msk.f32.mxu0 %vm569_vm0, %v570_v1  ;;  %v43_v3 = vld [vmem:[#allocation2 + $0x8] sm:$0xff]  ;;  %v44_v4 = vld [vmem:[#allocation2 + $0x10] sm:$0xff]  ;;  %v45_v6 = vld [vmem:[#allocation2 + $0x18] sm:$0xff]  ;;  %vm53_vm1 = vcmask 261120   ;;  %s571_s9 = smov [#allocation5]   ;;  %vm315_vm2 = vcmask 64512  }
  0x15   :  { %462 = vmatprep.subr.bf16.mxu1 %v568_v0  ;;  %418 = vmatprep.mubr.msk.f32.mxu1 %vm569_vm0, %v570_v1  ;;  %v457_v5 = vpack.c.bf16 %v43_v3, %v42_v2  ;;  %v128_v7 = vld [vmem:[%s768_s3] sm:$0xff]  ;;  %v129_v8 = vld [vmem:[%s768_s3 + $0x8] sm:$0xff]  ;;  %v130_v9 = vld [vmem:[%s768_s3 + $0x10] sm:$0xff]  ;;  %v460_v11 = vpack.c.bf16 %v45_v6, %v44_v4  ;;  %s323_s10 = sshll.u32 %s571_s9, 4  ;;  %s324_s10 = int_to_ptr.vmem [resolvable:$true] %s323_s10 }
  0x16   :  { %v131_v10 = vld [vmem:[%s768_s3 + $0x18] sm:$0xff]  ;;  %v463_v12 = vpack.c.bf16 %v129_v8, %v128_v7  ;;  %v132_v14 = vld [vmem:[%s768_s3 + $0x20] sm:$0xff]  ;;  %v133_v15 = vld [vmem:[%s768_s3 + $0x28] sm:$0xff]  ;;  %p544_p9 = scmp.lt.s32.totalorder %s324_s10, %s324_s10 }
  0x17   :  { %458 = vmatpush3.bf16.msra.mxu0 %v457_v5  ;;  %v466_v13 = vpack.c.bf16 %v131_v10, %v130_v9  ;;  %v41_v16 = vld [vmem:[%s765_s0] sm:$0xff]  ;;  %v469_v17 = vpack.c.bf16 %v133_v15, %v132_v14  ;;  %v134_v18 = vld [vmem:[%s768_s3 + $0x30] sm:$0xff]  ;;  %v135_v19 = vld [vmem:[%s768_s3 + $0x38] sm:$0xff] }
  0x18   :  { %459 = vmatprep.subr.bf16.mxu0 %v568_v0  ;;  %464 = vmatpush3.bf16.msra.mxu1 %v463_v12  ;;  %v472_v20 = vpack.c.bf16 %v135_v19, %v134_v18  ;;  %v136_v21 = vld [vmem:[%s768_s3 + $0x40] sm:$0xff]  ;;  %v137_v22 = vld [vmem:[%s768_s3 + $0x48] sm:$0xff]  ;;  %v138_v24 = vld [vmem:[%s768_s3 + $0x50] sm:$0xff] }
  0x19   :  { %465 = vmatprep.subr.bf16.mxu1 %v568_v0  ;;  %v475_v23 = vpack.c.bf16 %v137_v22, %v136_v21  ;;  %v139_v25 = vld [vmem:[%s768_s3 + $0x58] sm:$0xff]  ;;  %v140_v27 = vld [vmem:[%s768_s3 + $0x60] sm:$0xff]  ;;  %v141_v28 = vld [vmem:[%s768_s3 + $0x68] sm:$0xff] }
  0x1a   :  { %v478_v26 = vpack.c.bf16 %v139_v25, %v138_v24  ;;  %v481_v29 = vpack.c.bf16 %v141_v28, %v140_v27  ;;  %v142_v30 = vld [vmem:[%s768_s3 + $0x70] sm:$0xff]  ;;  %v143_v31 = vld [vmem:[%s768_s3 + $0x78] sm:$0xff]  ;;  %v222_v33 = vld [vmem:[%s770_s5] sm:$0xff] }
  0x1b   :  { %461 = vmatpush3.bf16.msra.mxu0 %v460_v11  ;;  %v484_v32 = vpack.c.bf16 %v143_v31, %v142_v30  ;;  %v223_v34 = vld [vmem:[%s770_s5 + $0x8] sm:$0xff]  ;;  %v224_v35 = vld [vmem:[%s770_s5 + $0x10] sm:$0xff]  ;;  %v225_v37 = vld [vmem:[%s770_s5 + $0x18] sm:$0xff] }
  0x1c   :  { %486 = vmatprep.subr.bf16.mxu0 %v568_v0  ;;  %467 = vmatpush3.bf16.msra.mxu1 %v466_v13  ;;  %v487_v36 = vpack.c.bf16 %v223_v34, %v222_v33  ;;  %v490_v38 = vpack.c.bf16 %v225_v37, %v224_v35  ;;  %v226_v39 = vld [vmem:[%s770_s5 + $0x20] sm:$0xff]  ;;  %v227_v40 = vld [vmem:[%s770_s5 + $0x28] sm:$0xff]  ;;  %v228_v42 = vld [vmem:[%s770_s5 + $0x30] sm:$0xff] }
  0x1d   :  { %468 = vmatprep.subr.bf16.mxu1 %v568_v0  ;;  %v493_v41 = vpack.c.bf16 %v227_v40, %v226_v39  ;;  %v229_v43 = vld [vmem:[%s770_s5 + $0x38] sm:$0xff]  ;;  %v230_v45 = vld [vmem:[%s770_s5 + $0x40] sm:$0xff]  ;;  %v231_v46 = vld [vmem:[%s770_s5 + $0x48] sm:$0xff] }
  0x1e   :  { %384 = vmatmul.mubr.msk.f32.vlgmr.msra.gmra.mrb[0].mxu0 %vm53_vm1, %v41_v16  ;;  %v496_v44 = vpack.c.bf16 %v229_v43, %v228_v42  ;;  %v499_v47 = vpack.c.bf16 %v231_v46, %v230_v45  ;;  %v232_v48 = vld [vmem:[%s770_s5 + $0x50] sm:$0xff]  ;;  %v233_v49 = vld [vmem:[%s770_s5 + $0x58] sm:$0xff]  ;;  %v234_v51 = vld [vmem:[%s770_s5 + $0x60] sm:$0xff] }
  0x1f   :  { %453 = vmatprep.mubr.msk.f32.mxu0 %vm569_vm0, %v570_v1  ;;  %488 = vmatpush3.bf16.msra.mxu0 %v487_v36  ;;  %v502_v50 = vpack.c.bf16 %v233_v49, %v232_v48  ;;  %v235_v52 = vld [vmem:[%s770_s5 + $0x68] sm:$0xff]  ;;  %v332_v54 = vld [vmem:[%s767_s2] ss:$0 sm:$0xff]  ;;  %v236_v59 = vld [vmem:[%s770_s5 + $0x70] sm:$0xff] }
  0x20   :  { %470 = vmatpush3.bf16.msra.mxu1 %v469_v17  ;;  %489 = vmatprep.subr.bf16.mxu0 %v568_v0  ;;  %v505_v53 = vpack.c.bf16 %v235_v52, %v234_v51  ;;  %v237_v60 = vld [vmem:[%s770_s5 + $0x78] sm:$0xff]  ;;  %v334_v62 = vld [vmem:[%s769_s4] ss:$0 sm:$0xff]  ;;  %s539_s5 = scalar_lea.vmem %s324_s10, 128 }
  0x21   :  { %471 = vmatprep.subr.bf16.mxu1 %v568_v0  ;;  %v508_v61 = vpack.c.bf16 %v237_v60, %v236_v59  ;;  %v335_v3 = vld [vmem:[%s771_s6] ss:$0 sm:$0xff]  ;;  %p540_p8 = scmp.ne.s32.totalorder %s324_s10, %s539_s5  ;;  %p545_p10 = scmp.lt.s32.totalorder %s539_s5, %s539_s5 }
  0x23   :  { %491 = vmatpush3.bf16.msra.mxu0 %v490_v38  ;;  %p546_p11 = por %p545_p10, %p544_p9 }
  0x24   :  { %473 = vmatpush3.bf16.msra.mxu1 %v472_v20  ;;  %492 = vmatprep.subr.bf16.mxu0 %v568_v0 }
  0x25   :  { %474 = vmatprep.subr.bf16.mxu1 %v568_v0  ;;  %p547_p12 = pnand %p546_p11, %p540_p8 }
  0x27   :  { %494 = vmatpush3.bf16.msra.mxu0 %v493_v41 }
  0x28   :  { %476 = vmatpush3.bf16.msra.mxu1 %v475_v23  ;;  %495 = vmatprep.subr.bf16.mxu0 %v568_v0 }
  0x29   :  { %477 = vmatprep.subr.bf16.mxu1 %v568_v0 }
  0x2b   :  { %497 = vmatpush3.bf16.msra.mxu0 %v496_v44 }
  0x2c   :  { %479 = vmatpush3.bf16.msra.mxu1 %v478_v26  ;;  %498 = vmatprep.subr.bf16.mxu0 %v568_v0 }
  0x2d   :  { %480 = vmatprep.subr.bf16.mxu1 %v568_v0 }
  0x2f   :  { %500 = vmatpush3.bf16.msra.mxu0 %v499_v47 }
  0x30   :  { %482 = vmatpush3.bf16.msra.mxu1 %v481_v29  ;;  %501 = vmatprep.subr.bf16.mxu0 %v568_v0 }
  0x31   :  { %483 = vmatprep.subr.bf16.mxu1 %v568_v0 }
  0x33   :  { %503 = vmatpush3.bf16.msra.mxu0 %v502_v50 }
  0x34   :  { %485 = vmatpush3.bf16.msra.mxu1 %v484_v32  ;;  %504 = vmatprep.subr.bf16.mxu0 %v568_v0 }
  0x37   :  { %506 = vmatpush3.bf16.msra.mxu0 %v505_v53 }
  0x38   :  { %507 = vmatprep.subr.bf16.mxu0 %v568_v0 }
  0x3b   :  { %509 = vmatpush3.bf16.msra.mxu0 %v508_v61 }
  0xf1   :  { %v123_v55 = vpop.f32.mrb[0].mxu0 }
  0xf2   :  { %v124_v56 = vadd.f32 %v332_v54, %v123_v55  ;;  %v385_v57 = vpop.f32.mrb[1].mxu0 }
  0xf4   :  { %v127_v58 = vmax.f32 %v124_v56, 0.0 }
  0xf6   :  { %419 = vmatmul.mubr.f32.vlgmr.msra.gmra.mrb[0].mxu1 %v127_v58 }
 0x1c9   :  { %v217_v63 = vpop.f32.mrb[0].mxu1 }
 0x1ca   :  { %v218_v0 = vadd.f32 %v334_v62, %v217_v63  ;;  %v420_v1 = vpop.f32.mrb[1].mxu1 }
 0x1cc   :  { %v221_v2 = vmax.f32 %v218_v0, 0.0 }
 0x1ce   :  { %454 = vmatmul.mubr.f32.vlgmr.msra.gmra.mrb[2].mxu0 %v221_v2 }
 0x2a1   :  { %v311_v4 = vpop.f32.mrb[2].mxu0 }
 0x2a2   :  { %v312_v5 = vadd.f32 %v335_v3, %v311_v4  ;;  %v455_v6 = vpop.f32.mrb[3].mxu0 }
 0x2a4   :  { %316 = vst.msk [vmem:[#allocation5] sm:$0xff] %vm315_vm2, %v312_v5 }
 0x2a5   :  { %550 = shalt.err (!%p547_p12)
}
 0x2a6   :  { %s551_s12 = scalar_lea.hbm %s772_s7, 128 }
 0x2a7   :  { %p552_p13 = scmp.ne.s32.totalorder %s772_s7, %s551_s12  ;;  %p555_p0 = scmp.lt.u32.totalorder %s551_s12, %s772_s7 }
 0x2a9   :  { %p557_p1 = pnand %p555_p0, %p552_p13 }
 0x2ab   :  { %560 = shalt.err (!%p557_p1)
}
 0x2ac   :  { %326 = dma.vmem_to_hbm [thread:$0]  %s324_s10, 128, %s772_s7, [#allocation4]  }
 0x2ad   :  { %563 = dma.done.wait [#allocation4], 128  }
 0x2ae   :  { %564 = vsyncadd [#allocation4], 4294967168 }
 0x2af   :  { %330 = vsyncpa [#allocation3], 1 }
 0x2b0   :  { %331 = vsyncpa [#allocation4], 1 }

</bundles_post_ra>
